<compile_context>
chip_gen: v5e
topology: v5e:2x2
jax: 0.10.0
libtpu: 0.0.40
codegen_flags: <defaults>
</compile_context>

<pallas_src>
import math

import jax
import jax.numpy as jnp
from jax.experimental import pallas as pl
from jax.experimental.pallas import tpu as pltpu


def _round_up(n, m):
    return ((n + m - 1) // m) * m


def _choose_fold(out_dim):
    """Pick how many tokens to fold into one output row for a lane-dense store."""
    if out_dim >= 128:
        return 1
    # smallest fold making fold*out_dim a multiple of 128, if that stays small
    fold = 128 // math.gcd(out_dim, 128)
    if fold * out_dim <= 4096:
        return fold
    # fallback: just make the store reasonably wide
    return pl.cdiv(256, out_dim)


def _make_posenc_kernel(fold, dim, num_octaves):
    dmk = dim * num_octaves          # per-token sine (and cosine) block width

    def kernel(x_ref, mult_ref, o_ref):
        x = x_ref[...]               # (rows, fold*dim)
        mult = mult_ref[...]         # (1, K)

        # Lane-dense scaled block:
        #   scaled[:, (t*dim + d)*K + k] = x[:, t*dim + d] * mult[0, k]
        scaled = jnp.concatenate(
            [x[:, c:c + 1] * mult for c in range(fold * dim)], axis=-1)  # (rows, fold*dmk)

        # Evaluate transcendentals once over the whole dense block.
        sines = jnp.sin(scaled)
        cosines = jnp.cos(scaled)

        # Interleave per token: [sin_t (dmk) | cos_t (dmk)] for t = 0..fold-1,
        # matching the torch layout after the wrapper-side un-fold reshape.
        pieces = []
        for t in range(fold):
            pieces.append(sines[:, t * dmk:(t + 1) * dmk])
            pieces.append(cosines[:, t * dmk:(t + 1) * dmk])

        # Single lane-dense full-block store (width = fold * 2*dim*K).
        o_ref[...] = jnp.concatenate(pieces, axis=-1).astype(o_ref.dtype)

    return kernel


def positional_encoding(coords, num_octaves=8, start_octave=0, *,
                        max_rows_per_tile=512):
    """coords: (..., dim) float array. Returns (..., 2*dim*num_octaves)."""
    *lead, dim = coords.shape
    K = int(num_octaves)
    out_dim = 2 * dim * K
    dtype = coords.dtype

    M = 1
    for s in lead:
        M *= int(s)
    if M == 0:
        return jnp.zeros(tuple(lead) + (out_dim,), dtype=dtype)

    octaves = jnp.arange(start_octave, start_octave + K, dtype=jnp.float32)
    mult = ((2.0 ** octaves) * math.pi).reshape(1, K).astype(dtype)

    fold = _choose_fold(out_dim)

    # Rows (folded-token groups) and tile sizing (VMEM-capped output tile ~2 MiB).
    R = pl.cdiv(M, fold)
    itemsize = jnp.dtype(dtype).itemsize
    bytes_per_out_row = fold * out_dim * itemsize
    rows_tile = (2 << 20) // max(bytes_per_out_row, 1)
    rows_tile = max(8, min(max_rows_per_tile, (rows_tile // 8) * 8))
    rows_tile = min(rows_tile, _round_up(R, 8))

    Rp = _round_up(R, rows_tile)
    Mp = Rp * fold

    x2 = coords.reshape(M, dim)
    if Mp != M:
        x2 = jnp.pad(x2, ((0, Mp - M), (0, 0)))
    # Free reshape: tokens are contiguous, so (Mp, dim) and (Rp, fold*dim) share layout.
    x2 = x2.reshape(Rp, fold * dim)

    kernel = _make_posenc_kernel(fold, dim, K)

    out = pl.pallas_call(
        kernel,
        out_shape=jax.ShapeDtypeStruct((Rp, fold * out_dim), dtype),
        grid_spec=pltpu.PrefetchScalarGridSpec(
            num_scalar_prefetch=0,
            grid=(Rp // rows_tile,),
            in_specs=[
                pl.BlockSpec((rows_tile, fold * dim), lambda i: (i, 0)),
                pl.BlockSpec((1, K), lambda i: (0, 0)),
            ],
            out_specs=pl.BlockSpec((rows_tile, fold * out_dim), lambda i: (i, 0)),
        ),
        compiler_params=pltpu.CompilerParams(
            dimension_semantics=("parallel",)),
    )(x2, mult)

    # Free un-fold reshape back to one row per token, then drop padding.
    out = out.reshape(Mp, out_dim)[:M]
    return out.reshape(tuple(lead) + (out_dim,))


if __name__ == "__main__":
    B, N, dim = 2, 8, 3
    num_octaves, start_octave = 8, 0

    key = jax.random.PRNGKey(0)
    coords = jax.random.uniform(key, (B, N, dim), dtype=jnp.float32,
                                minval=-1.0, maxval=1.0)

    out = positional_encoding(coords, num_octaves, start_octave)
    out = jax.block_until_ready(out)

    # pure-JAX reference (mirrors the torch module exactly)
    octs = jnp.arange(start_octave, start_octave + num_octaves, dtype=jnp.float32)
    mult = (2.0 ** octs) * math.pi
    scaled = coords[..., None] * mult                            # (B, N, dim, K)
    ref = jnp.concatenate(
        [jnp.sin(scaled).reshape(B, N, dim * num_octaves),
         jnp.cos(scaled).reshape(B, N, dim * num_octaves)], axis=-1)
    assert out.shape == (B, N, 2 * dim * num_octaves)
    assert jnp.allclose(out, ref, atol=1e-5, rtol=1e-5)

    # second config: nonzero start_octave, different octave count
    out2 = positional_encoding(coords, num_octaves=4, start_octave=-2)
    out2 = jax.block_until_ready(out2)
    octs2 = jnp.arange(-2, 2, dtype=jnp.float32)
    scaled2 = coords[..., None] * ((2.0 ** octs2) * math.pi)
    ref2 = jnp.concatenate(
        [jnp.sin(scaled2).reshape(B, N, dim * 4),
         jnp.cos(scaled2).reshape(B, N, dim * 4)], axis=-1)
    assert out2.shape == (B, N, 2 * dim * 4)
    assert jnp.allclose(out2, ref2, atol=1e-5, rtol=1e-5)

    print("KERNEL_OK")
</pallas_src>

<mosaic_0001>
module attributes {stable_mosaic.version = 11 : i64} {
  func.func @kernel(%arg0: i32, %arg1: memref<8x24xf32, #tpu.memory_space<vmem>>, %arg2: memref<1x8xf32, #tpu.memory_space<vmem>>, %arg3: memref<8x384xf32, #tpu.memory_space<vmem>>) attributes {dimension_semantics = [#tpu.dimension_semantics<parallel>], iteration_bounds = array<i64: 1>, scalar_prefetch = 0 : i64, scratch_operands = 0 : i64, tpu.core_type = #tpu.core_type<tc>, window_params = [{transform_indices = @transform_0, window_bounds = array<i64: 8, 24>}, {pipeline_mode = #tpu.pipeline_mode<synchronous>, transform_indices = @transform_1, window_bounds = array<i64: 1, 8>}, {transform_indices = @transform_2, window_bounds = array<i64: 8, 384>}]} {
    %c0 = arith.constant 0 : index
    %c0_0 = arith.constant 0 : index
    %0 = vector.load %arg1[%c0, %c0_0] : memref<8x24xf32, #tpu.memory_space<vmem>>, vector<8x24xf32>
    %c0_1 = arith.constant 0 : index
    %c0_2 = arith.constant 0 : index
    %1 = vector.load %arg2[%c0_1, %c0_2] : memref<1x8xf32, #tpu.memory_space<vmem>>, vector<1x8xf32>
    %2 = vector.extract_strided_slice %0 {offsets = [0, 0], sizes = [8, 1], strides = [1, 1]} : vector<8x24xf32> to vector<8x1xf32>
    %3 = vector.broadcast %2 : vector<8x1xf32> to vector<8x8xf32>
    %4 = vector.broadcast %1 : vector<1x8xf32> to vector<8x8xf32>
    %5 = arith.mulf %3, %4 : vector<8x8xf32>
    %6 = vector.extract_strided_slice %0 {offsets = [0, 1], sizes = [8, 1], strides = [1, 1]} : vector<8x24xf32> to vector<8x1xf32>
    %7 = vector.broadcast %6 : vector<8x1xf32> to vector<8x8xf32>
    %8 = vector.broadcast %1 : vector<1x8xf32> to vector<8x8xf32>
    %9 = arith.mulf %7, %8 : vector<8x8xf32>
    %10 = vector.extract_strided_slice %0 {offsets = [0, 2], sizes = [8, 1], strides = [1, 1]} : vector<8x24xf32> to vector<8x1xf32>
    %11 = vector.broadcast %10 : vector<8x1xf32> to vector<8x8xf32>
    %12 = vector.broadcast %1 : vector<1x8xf32> to vector<8x8xf32>
    %13 = arith.mulf %11, %12 : vector<8x8xf32>
    %14 = vector.extract_strided_slice %0 {offsets = [0, 3], sizes = [8, 1], strides = [1, 1]} : vector<8x24xf32> to vector<8x1xf32>
    %15 = vector.broadcast %14 : vector<8x1xf32> to vector<8x8xf32>
    %16 = vector.broadcast %1 : vector<1x8xf32> to vector<8x8xf32>
    %17 = arith.mulf %15, %16 : vector<8x8xf32>
    %18 = vector.extract_strided_slice %0 {offsets = [0, 4], sizes = [8, 1], strides = [1, 1]} : vector<8x24xf32> to vector<8x1xf32>
    %19 = vector.broadcast %18 : vector<8x1xf32> to vector<8x8xf32>
    %20 = vector.broadcast %1 : vector<1x8xf32> to vector<8x8xf32>
    %21 = arith.mulf %19, %20 : vector<8x8xf32>
    %22 = vector.extract_strided_slice %0 {offsets = [0, 5], sizes = [8, 1], strides = [1, 1]} : vector<8x24xf32> to vector<8x1xf32>
    %23 = vector.broadcast %22 : vector<8x1xf32> to vector<8x8xf32>
    %24 = vector.broadcast %1 : vector<1x8xf32> to vector<8x8xf32>
    %25 = arith.mulf %23, %24 : vector<8x8xf32>
    %26 = vector.extract_strided_slice %0 {offsets = [0, 6], sizes = [8, 1], strides = [1, 1]} : vector<8x24xf32> to vector<8x1xf32>
    %27 = vector.broadcast %26 : vector<8x1xf32> to vector<8x8xf32>
    %28 = vector.broadcast %1 : vector<1x8xf32> to vector<8x8xf32>
    %29 = arith.mulf %27, %28 : vector<8x8xf32>
    %30 = vector.extract_strided_slice %0 {offsets = [0, 7], sizes = [8, 1], strides = [1, 1]} : vector<8x24xf32> to vector<8x1xf32>
    %31 = vector.broadcast %30 : vector<8x1xf32> to vector<8x8xf32>
    %32 = vector.broadcast %1 : vector<1x8xf32> to vector<8x8xf32>
    %33 = arith.mulf %31, %32 : vector<8x8xf32>
    %34 = vector.extract_strided_slice %0 {offsets = [0, 8], sizes = [8, 1], strides = [1, 1]} : vector<8x24xf32> to vector<8x1xf32>
    %35 = vector.broadcast %34 : vector<8x1xf32> to vector<8x8xf32>
    %36 = vector.broadcast %1 : vector<1x8xf32> to vector<8x8xf32>
    %37 = arith.mulf %35, %36 : vector<8x8xf32>
    %38 = vector.extract_strided_slice %0 {offsets = [0, 9], sizes = [8, 1], strides = [1, 1]} : vector<8x24xf32> to vector<8x1xf32>
    %39 = vector.broadcast %38 : vector<8x1xf32> to vector<8x8xf32>
    %40 = vector.broadcast %1 : vector<1x8xf32> to vector<8x8xf32>
    %41 = arith.mulf %39, %40 : vector<8x8xf32>
    %42 = vector.extract_strided_slice %0 {offsets = [0, 10], sizes = [8, 1], strides = [1, 1]} : vector<8x24xf32> to vector<8x1xf32>
    %43 = vector.broadcast %42 : vector<8x1xf32> to vector<8x8xf32>
    %44 = vector.broadcast %1 : vector<1x8xf32> to vector<8x8xf32>
    %45 = arith.mulf %43, %44 : vector<8x8xf32>
    %46 = vector.extract_strided_slice %0 {offsets = [0, 11], sizes = [8, 1], strides = [1, 1]} : vector<8x24xf32> to vector<8x1xf32>
    %47 = vector.broadcast %46 : vector<8x1xf32> to vector<8x8xf32>
    %48 = vector.broadcast %1 : vector<1x8xf32> to vector<8x8xf32>
    %49 = arith.mulf %47, %48 : vector<8x8xf32>
    %50 = vector.extract_strided_slice %0 {offsets = [0, 12], sizes = [8, 1], strides = [1, 1]} : vector<8x24xf32> to vector<8x1xf32>
    %51 = vector.broadcast %50 : vector<8x1xf32> to vector<8x8xf32>
    %52 = vector.broadcast %1 : vector<1x8xf32> to vector<8x8xf32>
    %53 = arith.mulf %51, %52 : vector<8x8xf32>
    %54 = vector.extract_strided_slice %0 {offsets = [0, 13], sizes = [8, 1], strides = [1, 1]} : vector<8x24xf32> to vector<8x1xf32>
    %55 = vector.broadcast %54 : vector<8x1xf32> to vector<8x8xf32>
    %56 = vector.broadcast %1 : vector<1x8xf32> to vector<8x8xf32>
    %57 = arith.mulf %55, %56 : vector<8x8xf32>
    %58 = vector.extract_strided_slice %0 {offsets = [0, 14], sizes = [8, 1], strides = [1, 1]} : vector<8x24xf32> to vector<8x1xf32>
    %59 = vector.broadcast %58 : vector<8x1xf32> to vector<8x8xf32>
    %60 = vector.broadcast %1 : vector<1x8xf32> to vector<8x8xf32>
    %61 = arith.mulf %59, %60 : vector<8x8xf32>
    %62 = vector.extract_strided_slice %0 {offsets = [0, 15], sizes = [8, 1], strides = [1, 1]} : vector<8x24xf32> to vector<8x1xf32>
    %63 = vector.broadcast %62 : vector<8x1xf32> to vector<8x8xf32>
    %64 = vector.broadcast %1 : vector<1x8xf32> to vector<8x8xf32>
    %65 = arith.mulf %63, %64 : vector<8x8xf32>
    %66 = vector.extract_strided_slice %0 {offsets = [0, 16], sizes = [8, 1], strides = [1, 1]} : vector<8x24xf32> to vector<8x1xf32>
    %67 = vector.broadcast %66 : vector<8x1xf32> to vector<8x8xf32>
    %68 = vector.broadcast %1 : vector<1x8xf32> to vector<8x8xf32>
    %69 = arith.mulf %67, %68 : vector<8x8xf32>
    %70 = vector.extract_strided_slice %0 {offsets = [0, 17], sizes = [8, 1], strides = [1, 1]} : vector<8x24xf32> to vector<8x1xf32>
    %71 = vector.broadcast %70 : vector<8x1xf32> to vector<8x8xf32>
    %72 = vector.broadcast %1 : vector<1x8xf32> to vector<8x8xf32>
    %73 = arith.mulf %71, %72 : vector<8x8xf32>
    %74 = vector.extract_strided_slice %0 {offsets = [0, 18], sizes = [8, 1], strides = [1, 1]} : vector<8x24xf32> to vector<8x1xf32>
    %75 = vector.broadcast %74 : vector<8x1xf32> to vector<8x8xf32>
    %76 = vector.broadcast %1 : vector<1x8xf32> to vector<8x8xf32>
    %77 = arith.mulf %75, %76 : vector<8x8xf32>
    %78 = vector.extract_strided_slice %0 {offsets = [0, 19], sizes = [8, 1], strides = [1, 1]} : vector<8x24xf32> to vector<8x1xf32>
    %79 = vector.broadcast %78 : vector<8x1xf32> to vector<8x8xf32>
    %80 = vector.broadcast %1 : vector<1x8xf32> to vector<8x8xf32>
    %81 = arith.mulf %79, %80 : vector<8x8xf32>
    %82 = vector.extract_strided_slice %0 {offsets = [0, 20], sizes = [8, 1], strides = [1, 1]} : vector<8x24xf32> to vector<8x1xf32>
    %83 = vector.broadcast %82 : vector<8x1xf32> to vector<8x8xf32>
    %84 = vector.broadcast %1 : vector<1x8xf32> to vector<8x8xf32>
    %85 = arith.mulf %83, %84 : vector<8x8xf32>
    %86 = vector.extract_strided_slice %0 {offsets = [0, 21], sizes = [8, 1], strides = [1, 1]} : vector<8x24xf32> to vector<8x1xf32>
    %87 = vector.broadcast %86 : vector<8x1xf32> to vector<8x8xf32>
    %88 = vector.broadcast %1 : vector<1x8xf32> to vector<8x8xf32>
    %89 = arith.mulf %87, %88 : vector<8x8xf32>
    %90 = vector.extract_strided_slice %0 {offsets = [0, 22], sizes = [8, 1], strides = [1, 1]} : vector<8x24xf32> to vector<8x1xf32>
    %91 = vector.broadcast %90 : vector<8x1xf32> to vector<8x8xf32>
    %92 = vector.broadcast %1 : vector<1x8xf32> to vector<8x8xf32>
    %93 = arith.mulf %91, %92 : vector<8x8xf32>
    %94 = vector.extract_strided_slice %0 {offsets = [0, 23], sizes = [8, 1], strides = [1, 1]} : vector<8x24xf32> to vector<8x1xf32>
    %95 = vector.broadcast %94 : vector<8x1xf32> to vector<8x8xf32>
    %96 = vector.broadcast %1 : vector<1x8xf32> to vector<8x8xf32>
    %97 = arith.mulf %95, %96 : vector<8x8xf32>
    %98 = tpu.concatenate %5, %9, %13, %17, %21, %25, %29, %33, %37, %41, %45, %49, %53, %57, %61, %65 in 1 : vector<8x8xf32>, vector<8x8xf32>, vector<8x8xf32>, vector<8x8xf32>, vector<8x8xf32>, vector<8x8xf32>, vector<8x8xf32>, vector<8x8xf32>, vector<8x8xf32>, vector<8x8xf32>, vector<8x8xf32>, vector<8x8xf32>, vector<8x8xf32>, vector<8x8xf32>, vector<8x8xf32>, vector<8x8xf32> -> vector<8x128xf32>
    %99 = tpu.concatenate %69, %73, %77, %81, %85, %89, %93, %97 in 1 : vector<8x8xf32>, vector<8x8xf32>, vector<8x8xf32>, vector<8x8xf32>, vector<8x8xf32>, vector<8x8xf32>, vector<8x8xf32>, vector<8x8xf32> -> vector<8x64xf32>
    %100 = tpu.concatenate %98, %99 in 1 : vector<8x128xf32>, vector<8x64xf32> -> vector<8x192xf32>
    %101 = math.sin %100 : vector<8x192xf32>
    %102 = math.cos %100 : vector<8x192xf32>
    %103 = vector.extract_strided_slice %101 {offsets = [0, 0], sizes = [8, 24], strides = [1, 1]} : vector<8x192xf32> to vector<8x24xf32>
    %104 = vector.extract_strided_slice %102 {offsets = [0, 0], sizes = [8, 24], strides = [1, 1]} : vector<8x192xf32> to vector<8x24xf32>
    %105 = vector.extract_strided_slice %101 {offsets = [0, 24], sizes = [8, 24], strides = [1, 1]} : vector<8x192xf32> to vector<8x24xf32>
    %106 = vector.extract_strided_slice %102 {offsets = [0, 24], sizes = [8, 24], strides = [1, 1]} : vector<8x192xf32> to vector<8x24xf32>
    %107 = vector.extract_strided_slice %101 {offsets = [0, 48], sizes = [8, 24], strides = [1, 1]} : vector<8x192xf32> to vector<8x24xf32>
    %108 = vector.extract_strided_slice %102 {offsets = [0, 48], sizes = [8, 24], strides = [1, 1]} : vector<8x192xf32> to vector<8x24xf32>
    %109 = vector.extract_strided_slice %101 {offsets = [0, 72], sizes = [8, 24], strides = [1, 1]} : vector<8x192xf32> to vector<8x24xf32>
    %110 = vector.extract_strided_slice %102 {offsets = [0, 72], sizes = [8, 24], strides = [1, 1]} : vector<8x192xf32> to vector<8x24xf32>
    %111 = vector.extract_strided_slice %101 {offsets = [0, 96], sizes = [8, 24], strides = [1, 1]} : vector<8x192xf32> to vector<8x24xf32>
    %112 = vector.extract_strided_slice %102 {offsets = [0, 96], sizes = [8, 24], strides = [1, 1]} : vector<8x192xf32> to vector<8x24xf32>
    %113 = vector.extract_strided_slice %101 {offsets = [0, 120], sizes = [8, 24], strides = [1, 1]} : vector<8x192xf32> to vector<8x24xf32>
    %114 = vector.extract_strided_slice %102 {offsets = [0, 120], sizes = [8, 24], strides = [1, 1]} : vector<8x192xf32> to vector<8x24xf32>
    %115 = vector.extract_strided_slice %101 {offsets = [0, 144], sizes = [8, 24], strides = [1, 1]} : vector<8x192xf32> to vector<8x24xf32>
    %116 = vector.extract_strided_slice %102 {offsets = [0, 144], sizes = [8, 24], strides = [1, 1]} : vector<8x192xf32> to vector<8x24xf32>
    %117 = vector.extract_strided_slice %101 {offsets = [0, 168], sizes = [8, 24], strides = [1, 1]} : vector<8x192xf32> to vector<8x24xf32>
    %118 = vector.extract_strided_slice %102 {offsets = [0, 168], sizes = [8, 24], strides = [1, 1]} : vector<8x192xf32> to vector<8x24xf32>
    %119 = tpu.concatenate %103, %104, %105, %106, %107, %108, %109, %110, %111, %112, %113, %114, %115, %116, %117, %118 in 1 : vector<8x24xf32>, vector<8x24xf32>, vector<8x24xf32>, vector<8x24xf32>, vector<8x24xf32>, vector<8x24xf32>, vector<8x24xf32>, vector<8x24xf32>, vector<8x24xf32>, vector<8x24xf32>, vector<8x24xf32>, vector<8x24xf32>, vector<8x24xf32>, vector<8x24xf32>, vector<8x24xf32>, vector<8x24xf32> -> vector<8x384xf32>
    %c0_3 = arith.constant 0 : index
    %c0_4 = arith.constant 0 : index
    %120 = vector.load %arg3[%c0_3, %c0_4] : memref<8x384xf32, #tpu.memory_space<vmem>>, vector<8x384xf32>
    tpu.vector_store %arg3[%c0_3, %c0_4], %119 {strides = array<i32>} : memref<8x384xf32, #tpu.memory_space<vmem>>, vector<8x384xf32>,
    return
  }
  func.func @transform_0(%arg0: i32) -> (i32, i32) {
    %c0_i32 = arith.constant 0 : i32
    %c0_i32_0 = arith.constant 0 : i32
    return %arg0, %c0_i32 : i32, i32
  }
  func.func @transform_1(%arg0: i32) -> (i32, i32) {
    %c0_i32 = arith.constant 0 : i32
    %c0_i32_0 = arith.constant 0 : i32
    %c0_i32_1 = arith.constant 0 : i32
    return %c0_i32, %c0_i32_0 : i32, i32
  }
  func.func @transform_2(%arg0: i32) -> (i32, i32) {
    %c0_i32 = arith.constant 0 : i32
    %c0_i32_0 = arith.constant 0 : i32
    return %arg0, %c0_i32 : i32, i32
  }
}

</mosaic_0001>

<bundles_post_ra>
// kernel: tpu_custom_call.1
= control target key start
LH: loop header
LB: loop body
LE: loop exit
PB: predicated region body
PF: predicated region fallthrough
CT: control target
= control target key end

     0   :  { %7 = vsyncpa [#allocation3], 0  ;;  %s1497_s0 = inlined_call_operand.hbm [shape: f32[8,24], index: 0, kind: input, shape index: {}]   ;;  %s1498_s1 = inlined_call_operand.hbm [shape: f32[1,8], index: 1, kind: input, shape index: {}]   ;;  %s1499_s2 = inlined_call_operand.hbm [shape: f32[8,384], index: 2, kind: output, shape index: {}]  }
   0x1   :  { %8 = vsyncpa [#allocation6], 0 }
   0x2   :  { %9 = vsyncpa [#allocation4], 0  ;;  %s15_s11 = sshll.u32 %s1497_s0, 4  ;;  %s1165_s12 = smov [#allocation2]   ;;  %s16_s11 = int_to_ptr.hbm [resolvable:$true] %s15_s11 }
   0x3   :  { %s17_s13 = sshll.u32 %s1165_s12, 4  ;;  %s26_s16 = sshll.u32 %s1498_s1, 4  ;;  %s18_s13 = int_to_ptr.vmem [resolvable:$true] %s17_s13  ;;  %s27_s16 = int_to_ptr.hbm [resolvable:$true] %s26_s16 }
   0x4   :  { %20 = dma.hbm_to_vmem [thread:$0]  %s16_s11, 128, %s18_s13, [#allocation3]  }
   0x5   :  { %s1166_s17 = smov [#allocation5]  }
   0x6   :  { %s28_s18 = sshll.u32 %s1166_s17, 4  ;;  %s29_s18 = int_to_ptr.vmem [resolvable:$true] %s28_s18 }
   0x7   :  { %31 = dma.hbm_to_vmem [thread:$0]  %s27_s16, 16, %s29_s18, [#allocation6]  }
   0x8   :  { %1159 = dma.done.wait [#allocation3], 128  }
   0x9   :  { %1160 = vsyncadd [#allocation3], 4294967168 }
   0xa   :  { %1161 = dma.done.wait [#allocation6], 16  }
   0xb   :  { %1162 = vsyncadd [#allocation6], 4294967280  ;;  %v1167_v0 = vmov 2   ;;  %v1168_v1 = vmov 0   ;;  %v1169_v2 = vmov 4   ;;  %v1235_v3 = vld [vmem:[#allocation2] sm:$0xff] }
   0xc   :  { %1063 = vset.pattern.permute.xlu1 %v1167_v0  ;;  %1061 = vset.pattern.permute.xlu0 %v1168_v1  ;;  %v1170_v4 = vmov 3   ;;  %v1171_v5 = vmov 1   ;;  %v1172_v6 = vmov 5   ;;  %v1173_v7 = vmov 6   ;;  %v1261_v26 = vld [vmem:[#allocation5] ss:$0 sm:$0xff] }
   0xd   :  { %1065 = vset.pattern.permute.xlu2 %v1169_v2  ;;  %57 = vperm.xlu1 %1063, %v1235_v3   ;;  %v1174_v8 = vmov 8   ;;  %v1175_v9 = vmov 7   ;;  %v1176_v10 = vmov 9   ;;  %v1177_v11 = vmov 11   ;;  %s1191_s0 = smov 16   ;;  %s1192_s1 = smov 40  }
   0xe   :  { %44 = vperm.xlu0 %1061, %v1235_v3   ;;  %67 = vperm.xlu2 %1065, %v1235_v3   ;;  %v1178_v12 = vmov 17   ;;  %v1179_v13 = vmov 10   ;;  %v1180_v14 = vmov 21   ;;  %v1181_v15 = vmov 18   ;;  %s1193_s19 = smov 24   ;;  %s1194_s20 = smov 8  }
   0xf   :  { %v1182_v16 = vmov 19   ;;  %v1183_v17 = vmov 12   ;;  %v1184_v18 = vmov 20   ;;  %v1185_v19 = vmov 13   ;;  %s1195_s21 = smov 56   ;;  %s1196_s22 = smov 32  }
  0x10   :  { %v1186_v20 = vmov 14   ;;  %v1187_v21 = vmov 22   ;;  %v1188_v22 = vmov 15   ;;  %v1189_v23 = vmov 23   ;;  %s1197_s23 = smov 48   ;;  %s1198_s24 = smov 64  }
  0x11   :  { %v1190_v24 = vmov 16   ;;  %s1199_s25 = smov 72   ;;  %s1200_s26 = smov 80   ;;  %vm1506_vm0 = vcmask 64512   ;;  %vm228_vm1 = vcmask 130048   ;;  %vm230_vm2 = vcmask 195584  }
  0x12   :  { %s1201_s27 = smov 88   ;;  %s1202_s28 = smov 96   ;;  %vm1503_vm3 = vcmask 261120   ;;  %vm234_vm4 = vcmask 326656   ;;  %vm236_vm5 = vcmask 392192   ;;  %vm1502_vm6 = vcmask 457728  }
  0x13   :  { %s1203_s29 = smov 104   ;;  %s1204_s30 = smov 112   ;;  %vm1507_vm7 = vcmask 523264   ;;  %vm242_vm8 = vcmask 588800   ;;  %vm1501_vm9 = vcmask 654336   ;;  %vm1505_vm10 = vcmask 719872  }
  0x14   :  { %s1205_s3 = smov 120   ;;  %vm248_vm11 = vcmask 785408   ;;  %vm1500_vm12 = vcmask 850944   ;;  %vm1504_vm13 = vcmask 916480   ;;  %vm254_vm14 = vcmask 982016   ;;  %s1212_s4 = smov [#allocation7]  }
  0x15   :  { %1064 = vset.pattern.permute.xlu1 %v1170_v4  ;;  %s988_s5 = sshll.u32 %s1212_s4, 4  ;;  %s990_s8 = sshll.u32 %s1499_s2, 4  ;;  %s989_s5 = int_to_ptr.vmem [resolvable:$true] %s988_s5  ;;  %s991_s8 = int_to_ptr.hbm [resolvable:$true] %s990_s8 }
  0x16   :  { %1062 = vset.pattern.permute.xlu0 %v1171_v5  ;;  %62 = vperm.xlu1 %1064, %v1235_v3  }
  0x17   :  { %52 = vperm.xlu0 %1062, %v1235_v3   ;;  %1066 = vset.pattern.permute.xlu2 %v1172_v6 }
  0x18   :  { %72 = vperm.xlu2 %1066, %v1235_v3  }
  0x1e   :  { %1067 = vset.pattern.permute.xlu1 %v1173_v7 }
  0x1f   :  { %1069 = vset.pattern.permute.xlu0 %v1174_v8  ;;  %77 = vperm.xlu1 %1067, %v1235_v3  }
  0x20   :  { %87 = vperm.xlu0 %1069, %v1235_v3   ;;  %1068 = vset.pattern.permute.xlu2 %v1175_v9 }
  0x21   :  { %82 = vperm.xlu2 %1068, %v1235_v3  }
  0x27   :  { %1070 = vset.pattern.permute.xlu1 %v1176_v10 }
  0x28   :  { %1074 = vset.pattern.permute.xlu0 %v1177_v11  ;;  %92 = vperm.xlu1 %1070, %v1235_v3  }
  0x29   :  { %102 = vperm.xlu0 %1074, %v1235_v3   ;;  %1071 = vset.pattern.permute.xlu2 %v1178_v12 }
  0x2a   :  { %132 = vperm.xlu2 %1071, %v1235_v3  }
  0x30   :  { %1072 = vset.pattern.permute.xlu1 %v1179_v13 }
  0x31   :  { %1079 = vset.pattern.permute.xlu0 %v1180_v14  ;;  %97 = vperm.xlu1 %1072, %v1235_v3  }
  0x32   :  { %152 = vperm.xlu0 %1079, %v1235_v3   ;;  %1073 = vset.pattern.permute.xlu2 %v1181_v15 }
  0x33   :  { %137 = vperm.xlu2 %1073, %v1235_v3  }
  0x39   :  { %1075 = vset.pattern.permute.xlu1 %v1182_v16 }
  0x3a   :  { %142 = vperm.xlu1 %1075, %v1235_v3   ;;  %1084 = vset.pattern.permute.xlu0 %v1190_v24 }
  0x3b   :  { %1076 = vset.pattern.permute.xlu2 %v1183_v17  ;;  %127 = vperm.xlu0 %1084, %v1235_v3  }
  0x3c   :  { %107 = vperm.xlu2 %1076, %v1235_v3  }
  0x42   :  { %1077 = vset.pattern.permute.xlu1 %v1184_v18 }
  0x43   :  { %147 = vperm.xlu1 %1077, %v1235_v3   ;;  %1085 = vset.pattern.permute.xlu0 %v1189_v23 }
  0x44   :  { %1078 = vset.pattern.permute.xlu2 %v1185_v19 }
  0x45   :  { %112 = vperm.xlu2 %1078, %v1235_v3  }
  0x4b   :  { %1080 = vset.pattern.permute.xlu1 %v1186_v20 }
  0x4c   :  { %117 = vperm.xlu1 %1080, %v1235_v3  }
  0x4d   :  { %1081 = vset.pattern.permute.xlu2 %v1187_v21 }
  0x4e   :  { %157 = vperm.xlu2 %1081, %v1235_v3  }
  0x54   :  { %1082 = vset.pattern.permute.xlu1 %v1188_v22 }
  0x55   :  { %122 = vperm.xlu1 %1082, %v1235_v3  }
  0x56   :  { %1083 = vset.pattern.permute.xlu2 %v1189_v23 }
  0x57   :  { %162 = vperm.xlu2 %1083, %v1235_v3  }
  0x68   :  { %v68_v25 = vpop.permute.xlu2 %67 }
  0x69   :  { %v70_v38 = vmul.f32 %v1261_v26, %v68_v25 }
  0x72   :  { %v73_v27 = vpop.permute.xlu2 %72 }
  0x73   :  { %v75_v31 = vmul.f32 %v1261_v26, %v73_v27 }
  0x7b   :  { %v83_v32 = vpop.permute.xlu2 %82 }
  0x7c   :  { %v85_v37 = vmul.f32 %v1261_v26, %v83_v32 }
  0x7f   :  { %v58_v28 = vpop.permute.xlu1 %57 }
  0x80   :  { %v1263_v29 = vpop.permute.xlu0 %44  ;;  %v60_v30 = vmul.f32 %v1261_v26, %v58_v28 }
  0x81   :  { %v50_v12 = vmul.f32 %v1261_v26, %v1263_v29 }
  0x82   :  { %171 = vrot.lane.b32.xlu1 %v60_v30, %s1191_s0 }
  0x84   :  { %v133_v41 = vpop.permute.xlu2 %132 }
  0x85   :  { %v135_v47 = vmul.f32 %v1261_v26, %v133_v41 }
  0x88   :  { %v63_v33 = vpop.permute.xlu1 %62 }
  0x89   :  { %v53_v34 = vpop.permute.xlu0 %52  ;;  %v65_v35 = vmul.f32 %v1261_v26, %v63_v33 }
  0x8a   :  { %v55_v36 = vmul.f32 %v1261_v26, %v53_v34  ;;  %183 = vrot.lane.b32.xlu1 %v75_v31, %s1192_s1 }
  0x8b   :  { %175 = vrot.lane.b32.xlu2 %v65_v35, %s1193_s19 }
  0x8c   :  { %167 = vrot.lane.b32.xlu0 %v55_v36, %s1194_s20 }
  0x8d   :  { %v138_v46 = vpop.permute.xlu2 %137 }
  0x8e   :  { %v140_v48 = vmul.f32 %v1261_v26, %v138_v46 }
  0x91   :  { %v78_v39 = vpop.permute.xlu1 %77 }
  0x92   :  { %v80_v40 = vmul.f32 %v1261_v26, %v78_v39  ;;  %191 = vrot.lane.b32.xlu1 %v85_v37, %s1195_s21  ;;  %v88_v42 = vpop.permute.xlu0 %87 }
  0x93   :  { %v90_v43 = vmul.f32 %v1261_v26, %v88_v42 }
  0x94   :  { %179 = vrot.lane.b32.xlu0 %v70_v38, %s1196_s22  ;;  %187 = vrot.lane.b32.xlu2 %v80_v40, %s1197_s23 }
  0x96   :  { %v108_v52 = vpop.permute.xlu2 %107 }
  0x97   :  { %v110_v54 = vmul.f32 %v1261_v26, %v108_v52 }
  0x9a   :  { %v93_v44 = vpop.permute.xlu1 %92 }
  0x9b   :  { %v95_v45 = vmul.f32 %v1261_v26, %v93_v44  ;;  %v103_v51 = vpop.permute.xlu0 %102 }
  0x9c   :  { %195 = vrot.lane.b32.xlu2 %v90_v43, %s1198_s24  ;;  %v105_v53 = vmul.f32 %v1261_v26, %v103_v51 }
  0x9d   :  { %199 = vrot.lane.b32.xlu1 %v95_v45, %s1199_s25 }
  0x9f   :  { %v113_v58 = vpop.permute.xlu2 %112 }
  0xa0   :  { %v115_v60 = vmul.f32 %v1261_v26, %v113_v58 }
  0xa3   :  { %v98_v49 = vpop.permute.xlu1 %97 }
  0xa4   :  { %v100_v50 = vmul.f32 %v1261_v26, %v98_v49  ;;  %257 = vrot.lane.b32.xlu2 %v135_v47, %s1194_s20  ;;  %v153_v57 = vpop.permute.xlu0 %152 }
  0xa5   :  { %261 = vrot.lane.b32.xlu1 %v140_v48, %s1191_s0  ;;  %v155_v59 = vmul.f32 %v1261_v26, %v153_v57 }
  0xa6   :  { %203 = vrot.lane.b32.xlu0 %v100_v50, %s1200_s26 }
  0xa8   :  { %v158_v63 = vpop.permute.xlu2 %157 }
  0xa9   :  { %v160_v0 = vmul.f32 %v1261_v26, %v158_v63 }
  0xac   :  { %v143_v55 = vpop.permute.xlu1 %142  ;;  %207 = vrot.lane.b32.xlu2 %v105_v53, %s1201_s27 }
  0xad   :  { %v145_v56 = vmul.f32 %v1261_v26, %v143_v55  ;;  %211 = vrot.lane.b32.xlu1 %v110_v54, %s1202_s28  ;;  %v128_v9 = vpop.permute.xlu0 %127 }
  0xae   :  { %v130_v31 = vmul.f32 %v1261_v26, %v128_v9  ;;  %v1207_v9 = vmov 2475754826  }
  0xaf   :  { %265 = vrot.lane.b32.xlu0 %v145_v56, %s1193_s19 }
  0xb1   :  { %v163_v4 = vpop.permute.xlu2 %162 }
  0xb2   :  { %v165_v5 = vmul.f32 %v1261_v26, %v163_v4 }
  0xb5   :  { %v148_v61 = vpop.permute.xlu1 %147  ;;  %273 = vrot.lane.b32.xlu1 %v155_v59, %s1192_s1 }
  0xb6   :  { %v150_v62 = vmul.f32 %v1261_v26, %v148_v61 }
  0xb7   :  { %215 = vrot.lane.b32.xlu0 %v115_v60, %s1203_s29 }
  0xb8   :  { %269 = vrot.lane.b32.xlu2 %v150_v62, %s1196_s22 }
  0xbe   :  { %v118_v2 = vpop.permute.xlu1 %117 }
  0xbf   :  { %v120_v3 = vmul.f32 %v1261_v26, %v118_v2  ;;  %277 = vrot.lane.b32.xlu0 %v160_v0, %s1197_s23 }
  0xc1   :  { %219 = vrot.lane.b32.xlu2 %v120_v3, %s1204_s30 }
  0xc7   :  { %v123_v6 = vpop.permute.xlu1 %122 }
  0xc8   :  { %v125_v7 = vmul.f32 %v1261_v26, %v123_v6 }
  0xc9   :  { %281 = vrot.lane.b32.xlu2 %v165_v5, %s1195_s21 }
  0xca   :  { %223 = vrot.lane.b32.xlu1 %v125_v7, %s1205_s3  ;;  %v1206_v7 = vmov 683565275  }
  0xe5   :  { %v176_v8 = vpop.permute.xlu2 %175 }
  0xee   :  { %v188_v11 = vpop.permute.xlu2 %187 }
  0xf4   :  { %v172_v10 = vpop.permute.xlu1 %171 }
  0xf6   :  { %v196_v18 = vpop.permute.xlu2 %195 }
  0xfc   :  { %v184_v13 = vpop.permute.xlu1 %183 }
  0xfe   :  { %v168_v14 = vpop.permute.xlu0 %167  ;;  %v258_v20 = vpop.permute.xlu2 %257 }
  0xff   :  { %v227_v15 = vsel %vm1506_vm0, %v50_v12, %v168_v14  ;;  %v284_v35 = vsel %vm1506_vm0, %v130_v31, %v258_v20 }
 0x100   :  { %v229_v16 = vsel %vm228_vm1, %v227_v15, %v172_v10 }
 0x101   :  { %v231_v17 = vsel %vm230_vm2, %v229_v16, %v176_v8 }
 0x104   :  { %v192_v19 = vpop.permute.xlu1 %191 }
 0x106   :  { %v180_v21 = vpop.permute.xlu0 %179  ;;  %v208_v23 = vpop.permute.xlu2 %207 }
 0x107   :  { %v233_v30 = vsel %vm1503_vm3, %v231_v17, %v180_v21  ;;  %v1211_v21 = vmov 1326507024  }
 0x108   :  { %v235_v33 = vsel %vm234_vm4, %v233_v30, %v184_v13  ;;  %v1209_v13 = vmov 2102212464  }
 0x109   :  { %v237_v36 = vsel %vm236_vm5, %v235_v33, %v188_v11  ;;  %v1208_v11 = vmov 2131351028  }
 0x10a   :  { %v239_v40 = vsel %vm1502_vm6, %v237_v36, %v192_v19 }
 0x10b   :  { %v241_v44 = vsel %vm1507_vm7, %v239_v40, %v196_v18  ;;  %v1210_v18 = vmov 920167782  }
 0x10f   :  { %v200_v22 = vpop.permute.xlu1 %199 }
 0x110   :  { %v243_v46 = vsel %vm242_vm8, %v241_v44, %v200_v22 }
 0x112   :  { %v270_v27 = vpop.permute.xlu2 %269 }
 0x117   :  { %v262_v25 = vpop.permute.xlu1 %261 }
 0x118   :  { %v204_v24 = vpop.permute.xlu0 %203  ;;  %v285_v37 = vsel %vm228_vm1, %v284_v35, %v262_v25 }
 0x119   :  { %v245_v48 = vsel %vm1501_vm9, %v243_v46, %v204_v24 }
 0x11a   :  { %v247_v53 = vsel %vm1505_vm10, %v245_v48, %v208_v23 }
 0x11b   :  { %v220_v32 = vpop.permute.xlu2 %219 }
 0x11f   :  { %v212_v29 = vpop.permute.xlu1 %211 }
 0x120   :  { %v249_v54 = vsel %vm248_vm11, %v247_v53, %v212_v29 }
 0x121   :  { %v266_v28 = vpop.permute.xlu0 %265 }
 0x122   :  { %v286_v38 = vsel %vm230_vm2, %v285_v37, %v266_v28 }
 0x123   :  { %v287_v26 = vsel %vm1503_vm3, %v286_v38, %v270_v27  ;;  %v282_v41 = vpop.permute.xlu2 %281 }
 0x127   :  { %v274_v39 = vpop.permute.xlu1 %273 }
 0x128   :  { %v288_v42 = vsel %vm234_vm4, %v287_v26, %v274_v39 }
 0x129   :  { %v216_v34 = vpop.permute.xlu0 %215 }
 0x12a   :  { %v251_v57 = vsel %vm1500_vm12, %v249_v54, %v216_v34 }
 0x12b   :  { %v253_v61 = vsel %vm1504_vm13, %v251_v57, %v220_v32 }
 0x131   :  { %v278_v43 = vpop.permute.xlu0 %277 }
 0x132   :  { %v289_v45 = vsel %vm236_vm5, %v288_v42, %v278_v43 }
 0x133   :  { %v1322_v47 = vsel %vm1502_vm6, %v289_v45, %v282_v41 }
 0x134   :  { %v446_v49 = vand.u32 2147483647, %v1322_v47  ;;  %v449_v50 = vand.u32 2139095040, %v1322_v47 }
 0x136   :  { %v450_v51 = vshrl.u32 %v449_v50, 23  ;;  %v453_v52 = vand.u32 8388607, %v446_v49 }
 0x138   :  { %v1004_v55 = vadd.s32 4294967169, %v450_v51  ;;  %v454_v56 = vor.u32 8388608, %v453_v52 }
 0x13a   :  { %v456_v58 = vadd.s32 1, %v1004_v55  ;;  %v1332_v59 = vshll.u32 %v454_v56, 8 }
 0x13c   :  { %vm457_vm15 = vcmp.gt.s32.totalorder %v456_v58, 0  ;;  %v224_v60 = vpop.permute.xlu1 %223  ;;  %v495_v4 = vand.u32 65535, %v1332_v59  ;;  %v496_v43 = vshrl.u32 %v1332_v59, 16 }
 0x13d   :  { %v458_v62 = vsel %vm457_vm15, %v456_v58, 0  ;;  %v1336_v63 = vsel %vm254_vm14, %v253_v61, %v224_v60 }
 0x13e   :  { %v460_v0 = vand.u32 31, %v458_v62  ;;  %v459_v2 = vshrl.u32 %v458_v62, 5  ;;  %v291_v5 = vand.u32 2147483647, %v1336_v63  ;;  %v294_v6 = vand.u32 2139095040, %v1336_v63 }
 0x140   :  { %v461_v3 = vsub.s32 32, %v460_v0  ;;  %v463_v8 = vshll.u32 %v1206_v7, %v460_v0  ;;  %v466_v10 = vshll.u32 %v1207_v9, %v460_v0  ;;  %v469_v12 = vshll.u32 %v1208_v11, %v460_v0 }
 0x141   :  { %v472_v14 = vshll.u32 %v1209_v13, %v460_v0  ;;  %v475_v19 = vshll.u32 %v1210_v18, %v460_v0  ;;  %vm478_vm15 = vcmp.lt.s32.totalorder %v459_v2, 1  ;;  %vm479_vm12 = vcmp.lt.s32.totalorder %v459_v2, 2 }
 0x142   :  { %v464_v15 = vshrl.u32 %v1207_v9, %v461_v3  ;;  %v467_v16 = vshrl.u32 %v1208_v11, %v461_v3  ;;  %v470_v17 = vshrl.u32 %v1209_v13, %v461_v3  ;;  %v473_v20 = vshrl.u32 %v1210_v18, %v461_v3 }
 0x143   :  { %v476_v22 = vshrl.u32 %v1211_v21, %v461_v3  ;;  %v462_v23 = vshrl.u32 %v1206_v7, %v461_v3  ;;  %vm481_vm9 = vcmp.lt.s32.totalorder %v459_v2, 4  ;;  %v295_v30 = vshrl.u32 %v294_v6, 23 }
 0x144   :  { %v465_v24 = vor.u32 %v464_v15, %v463_v8  ;;  %v468_v25 = vor.u32 %v467_v16, %v466_v10  ;;  %v471_v27 = vor.u32 %v470_v17, %v469_v12  ;;  %v474_v28 = vor.u32 %v473_v20, %v472_v14 }
 0x145   :  { %v477_v29 = vor.u32 %v476_v22, %v475_v19  ;;  %v1356_v34 = vand.u32 8388607, %v291_v5  ;;  %vm480_vm6 = vcmp.lt.s32.totalorder %v459_v2, 3  ;;  %v1001_v37 = vadd.s32 4294967169, %v295_v30 }
 0x146   :  { %v483_v31 = vsel %vm481_vm9, %v471_v27, 2102212464  ;;  %v486_v32 = vsel %vm478_vm15, %v465_v24, %v468_v25  ;;  %v490_v33 = vsel %vm478_vm15, %v468_v25, %v471_v27  ;;  %v487_v35 = vsel %vm481_vm9, %v474_v28, 920167782 }
 0x147   :  { %v491_v36 = vsel %vm481_vm9, %v477_v29, 1326507024  ;;  %v482_v38 = vsel %vm478_vm15, %v462_v23, %v465_v24  ;;  %v484_v39 = vsel %vm480_vm6, %v468_v25, %v483_v31  ;;  %v488_v40 = vsel %vm480_vm6, %v471_v27, %v487_v35 }
 0x148   :  { %v492_v26 = vsel %vm480_vm6, %v474_v28, %v491_v36  ;;  %v489_v41 = vsel %vm479_vm12, %v486_v32, %v488_v40  ;;  %v301_v44 = vadd.s32 1, %v1001_v37  ;;  %v1363_v51 = vsel %vm479_vm12, %v482_v38, %v484_v39 }
 0x149   :  { %v493_v42 = vsel %vm479_vm12, %v490_v33, %v492_v26  ;;  %v519_v48 = vand.u32 65535, %v489_v41  ;;  %v520_v50 = vshrl.u32 %v489_v41, 16  ;;  %v299_v54 = vor.u32 8388608, %v1356_v34 }
 0x14a   :  { %v497_v45 = vand.u32 65535, %v493_v42  ;;  %v498_v46 = vshrl.u32 %v493_v42, 16  ;;  %vm302_vm9 = vcmp.gt.s32.totalorder %v301_v44, 0 }
 0x14b   :  { %v522_v57 = vmul.u32 %v520_v50, %v495_v4  ;;  %v523_v58 = vmul.u32 %v519_v48, %v496_v43  ;;  %v521_v62 = vmul.u32 %v519_v48, %v495_v4  ;;  %v524_v0 = vmul.u32 %v520_v50, %v496_v43 }
 0x14c   :  { %v500_v52 = vmul.u32 %v498_v46, %v495_v4  ;;  %v501_v53 = vmul.u32 %v497_v45, %v496_v43  ;;  %v499_v55 = vmul.u32 %v497_v45, %v495_v4  ;;  %v502_v56 = vmul.u32 %v498_v46, %v496_v43 }
 0x14d   :  { %v525_v8 = vshll.u32 %v522_v57, 16  ;;  %v526_v10 = vshrl.u32 %v522_v57, 16  ;;  %v527_v12 = vshll.u32 %v523_v58, 16  ;;  %v303_v14 = vsel %vm302_vm9, %v301_v44, 0 }
 0x14e   :  { %v503_v60 = vshll.u32 %v500_v52, 16  ;;  %v504_v61 = vshrl.u32 %v500_v52, 16  ;;  %v505_v3 = vshll.u32 %v501_v53, 16  ;;  %v506_v6 = vshrl.u32 %v501_v53, 16 }
 0x14f   :  { %v528_v16 = vshrl.u32 %v523_v58, 16  ;;  %vm529_vm12 = vc.u32 %v521_v62, %v525_v8  ;;  %v531_v17 = vadd.s32 %v525_v8, %v521_v62  ;;  %v305_v4 = vand.u32 31, %v303_v14 }
 0x150   :  { %vm507_vm6 = vc.u32 %v499_v55, %v503_v60  ;;  %v509_v2 = vadd.s32 %v503_v60, %v499_v55  ;;  %v530_v20 = vsel %vm529_vm12, 1, %v1168_v1  ;;  %v1370_v24 = vshrl.u32 %v303_v14, 5 }
 0x151   :  { %v508_v15 = vsel %vm507_vm6, 1, %v1168_v1  ;;  %v532_v23 = vadd.s32 %v530_v20, %v524_v0  ;;  %vm533_vm3 = vc.u32 %v531_v17, %v527_v12  ;;  %v1373_v28 = vadd.s32 %v531_v17, %v527_v12 }
 0x152   :  { %v510_v19 = vadd.s32 %v508_v15, %v502_v56  ;;  %vm511_vm15 = vc.u32 %v509_v2, %v505_v3  ;;  %v534_v27 = vsel %vm533_vm3, 1, %v1168_v1  ;;  %v306_v29 = vsub.s32 32, %v305_v4 }
 0x153   :  { %v512_v22 = vsel %vm511_vm15, 1, %v1168_v1  ;;  %v536_v30 = vadd.s32 %v534_v27, %v532_v23  ;;  %v308_v31 = vshll.u32 %v1206_v7, %v305_v4  ;;  %v311_v32 = vshll.u32 %v1207_v9, %v305_v4 }
 0x154   :  { %v514_v25 = vadd.s32 %v512_v22, %v510_v19  ;;  %v314_v33 = vshll.u32 %v1208_v11, %v305_v4  ;;  %v309_v35 = vshrl.u32 %v1207_v9, %v306_v29  ;;  %v312_v36 = vshrl.u32 %v1208_v11, %v306_v29 }
 0x155   :  { %v317_v37 = vshll.u32 %v1209_v13, %v305_v4  ;;  %v537_v38 = vadd.s32 %v536_v30, %v526_v10  ;;  %v315_v39 = vshrl.u32 %v1209_v13, %v306_v29  ;;  %v318_v40 = vshrl.u32 %v1210_v18, %v306_v29 }
 0x156   :  { %v515_v34 = vadd.s32 %v514_v25, %v504_v61  ;;  %v320_v26 = vshll.u32 %v1210_v18, %v305_v4  ;;  %v1386_v42 = vor.u32 %v309_v35, %v308_v31  ;;  %v1388_v43 = vor.u32 %v312_v36, %v311_v32 }
 0x157   :  { %v321_v44 = vshrl.u32 %v1211_v21, %v306_v29  ;;  %v538_v9 = vadd.s32 %v537_v38, %v528_v16  ;;  %v316_v45 = vor.u32 %v315_v39, %v314_v33  ;;  %v319_v11 = vor.u32 %v318_v40, %v317_v37 }
 0x158   :  { %v1384_v41 = vadd.s32 %v515_v34, %v506_v6  ;;  %v539_v46 = vmul.u32 %v1332_v59, %v1363_v51  ;;  %vm323_vm9 = vcmp.lt.s32.totalorder %v1370_v24, 1  ;;  %vm326_vm6 = vcmp.lt.s32.totalorder %v1370_v24, 4 }
 0x159   :  { %v322_v13 = vor.u32 %v321_v44, %v320_v26  ;;  %v542_v48 = vadd.s32 1, %v538_v9  ;;  %v1397_v18 = vshll.u32 %v299_v54, 8  ;;  %vm325_vm12 = vcmp.lt.s32.totalorder %v1370_v24, 3 }
 0x15a   :  { %vm541_vm3 = vc.u32 %v1384_v41, %v1373_v28  ;;  %v331_v21 = vsel %vm323_vm9, %v1386_v42, %v1388_v43  ;;  %v332_v59 = vsel %vm326_vm6, %v319_v11, 920167782  ;;  %v335_v50 = vsel %vm323_vm9, %v1388_v43, %v316_v45 }
 0x15b   :  { %v543_v51 = vsel %vm541_vm3, %v542_v48, %v538_v9  ;;  %vm324_vm15 = vcmp.lt.s32.totalorder %v1370_v24, 2  ;;  %v333_v52 = vsel %vm325_vm12, %v316_v45, %v332_v59  ;;  %v336_v53 = vsel %vm326_vm6, %v322_v13, 1326507024 }
 0x15c   :  { %v544_v54 = vadd.s32 %v543_v51, %v539_v46  ;;  %v334_v55 = vsel %vm324_vm15, %v331_v21, %v333_v52  ;;  %v337_v56 = vsel %vm325_vm12, %v319_v11, %v336_v53  ;;  %v340_v58 = vand.u32 65535, %v1397_v18 }
 0x15d   :  { %v338_v57 = vsel %vm324_vm15, %v335_v50, %v337_v56  ;;  %v364_v60 = vand.u32 65535, %v334_v55  ;;  %v365_v61 = vshrl.u32 %v334_v55, 16  ;;  %v341_v0 = vshrl.u32 %v1397_v18, 16 }
 0x15e   :  { %v545_v62 = vadd.s32 536870912, %v544_v54  ;;  %v342_v3 = vand.u32 65535, %v338_v57  ;;  %v343_v6 = vshrl.u32 %v338_v57, 16  ;;  %v307_v4 = vshrl.u32 %v1206_v7, %v306_v29 }
 0x15f   :  { %v367_v8 = vmul.u32 %v365_v61, %v340_v58  ;;  %v366_v14 = vmul.u32 %v364_v60, %v340_v58  ;;  %v368_v15 = vmul.u32 %v364_v60, %v341_v0  ;;  %v369_v23 = vmul.u32 %v365_v61, %v341_v0 }
 0x160   :  { %v1422_v10 = vshrl.u32 %v545_v62, 30  ;;  %v345_v2 = vmul.u32 %v343_v6, %v340_v58  ;;  %v346_v12 = vmul.u32 %v342_v3, %v341_v0  ;;  %v344_v19 = vmul.u32 %v342_v3, %v340_v58 }
 0x161   :  { %v370_v16 = vshll.u32 %v367_v8, 16  ;;  %v347_v22 = vmul.u32 %v343_v6, %v341_v0  ;;  %v372_v32 = vshll.u32 %v368_v15, 16  ;;  %v328_v7 = vsel %vm326_vm6, %v316_v45, 2102212464 }
 0x162   :  { %v547_v17 = vshll.u32 %v1422_v10, 30  ;;  %v348_v20 = vshll.u32 %v345_v2, 16  ;;  %v350_v27 = vshll.u32 %v346_v12, 16  ;;  %v349_v39 = vshrl.u32 %v345_v2, 16 }
 0x163   :  { %vm374_vm3 = vc.u32 %v366_v14, %v370_v16  ;;  %v376_v34 = vadd.s32 %v370_v16, %v366_v14  ;;  %v371_v9 = vshrl.u32 %v367_v8, 16  ;;  %v327_v46 = vsel %vm323_vm9, %v307_v4, %v1386_v42 }
 0x164   :  { %v548_v25 = vsub.s32 %v544_v54, %v547_v17  ;;  %vm352_vm13 = vc.u32 %v344_v19, %v348_v20  ;;  %v354_v30 = vadd.s32 %v348_v20, %v344_v19  ;;  %v375_v33 = vsel %vm374_vm3, 1, %v1168_v1 }
 0x165   :  { %v353_v31 = vsel %vm352_vm13, 1, %v1168_v1  ;;  %v377_v37 = vadd.s32 %v375_v33, %v369_v23  ;;  %vm378_vm7 = vc.u32 %v376_v34, %v372_v32  ;;  %v329_v45 = vsel %vm325_vm12, %v1388_v43, %v328_v7 }
 0x166   :  { %vm549_vm10 = vcmp.lt.s32.totalorder %v548_v25, 0  ;;  %v550_v35 = vsub.s32 0, %v548_v25  ;;  %v355_v36 = vadd.s32 %v353_v31, %v347_v22  ;;  %vm356_vm0 = vc.u32 %v354_v30, %v350_v27 }
 0x167   :  { %v357_v29 = vsel %vm356_vm0, 1, %v1168_v1  ;;  %v379_v26 = vsel %vm378_vm7, 1, %v1168_v1  ;;  %v351_v13 = vshrl.u32 %v346_v12, 16  ;;  %v373_v59 = vshrl.u32 %v368_v15, 16 }
 0x168   :  { %v551_v38 = vsel %vm549_vm10, %v550_v35, %v548_v25  ;;  %v359_v40 = vadd.s32 %v357_v29, %v355_v36  ;;  %v381_v11 = vadd.s32 %v379_v26, %v377_v37  ;;  %v380_v52 = vadd.s32 %v376_v34, %v372_v32 }
 0x169   :  { %v552_v44 = vclz %v551_v38  ;;  %v330_v1 = vsel %vm324_vm15, %v327_v46, %v329_v45  ;;  %v540_v42 = vadd.s32 %v1373_v28, %v1384_v41  ;;  %vm448_vm10 = vcmp.lt.s32.totalorder %v1322_v47, 0 }
 0x16a   :  { %v360_v48 = vadd.s32 %v359_v40, %v349_v39  ;;  %v382_v50 = vadd.s32 %v381_v11, %v371_v9  ;;  %v384_v57 = vmul.u32 %v1397_v18, %v330_v1  ;;  %vm447_vm9 = vcmp.le.f32.partialorder %v446_v49, 0.7853982 }
 0x16b   :  { %v1005_v21 = vadd.s32 4294967294, %v552_v44  ;;  %v570_v19 = vsub.s32 4, %v1422_v10 }
 0x16c   :  { %v361_v51 = vadd.s32 %v360_v48, %v351_v13  ;;  %v383_v53 = vadd.s32 %v382_v50, %v373_v59 }
 0x16d   :  { %vm1006_vm0 = vcmp.lt.s32.totalorder %v1005_v21, 0 }
 0x16e   :  { %v555_v54 = vsel %vm1006_vm0, 0, %v1005_v21  ;;  %vm386_vm7 = vc.u32 %v361_v51, %v380_v52  ;;  %v387_v43 = vadd.s32 1, %v383_v53  ;;  %v385_v49 = vadd.s32 %v380_v52, %v361_v51 }
 0x16f   :  { %v556_v55 = vsub.s32 32, %v555_v54  ;;  %v560_v56 = vsub.s32 4294967266, %v555_v54  ;;  %v557_v58 = vshll.u32 %v548_v25, %v555_v54  ;;  %v571_v25 = vsel %vm448_vm10, %v570_v19, %v1422_v10 }
 0x170   :  { %v388_v62 = vsel %vm386_vm7, %v387_v43, %v383_v53  ;;  %v573_v35 = vsel %vm447_vm9, 0, %v571_v25 }
 0x171   :  { %v558_v60 = vshrl.u32 %v540_v42, %v556_v55  ;;  %v561_v61 = vadd.s32 127, %v560_v56  ;;  %v389_v0 = vadd.s32 %v388_v62, %v384_v57  ;;  %v590_v9 = vadd.s32 3, %v573_v35 }
 0x172   :  { %v899_v13 = vand.u32 3, %v573_v35 }
 0x173   :  { %v559_v3 = vor.u32 %v558_v60, %v557_v58  ;;  %v562_v6 = vshll.u32 %v561_v61, 23  ;;  %v390_v24 = vadd.s32 536870912, %v389_v0  ;;  %v591_v50 = vand.u32 3, %v590_v9 }
 0x174   :  { %vm900_vm12 = vcmp.lt.s32.totalorder %v899_v13, 2  ;;  %vm901_vm15 = vcmp.eq.s32.totalorder %v899_v13, 0  ;;  %vm904_vm3 = vcmp.eq.s32.totalorder %v899_v13, 2 }
 0x175   :  { %v563_v8 = vor.u32 4788187, %v562_v6  ;;  %v1443_v2 = vshrl.u32 %v390_v24, 30  ;;  %v566_v14 = vcvt.s32.f32 %v559_v3  ;;  %vm592_vm0 = vcmp.lt.s32.totalorder %v591_v50, 2 }
 0x176   :  { %vm593_vm7 = vcmp.eq.s32.totalorder %v591_v50, 0 }
 0x177   :  { %v564_v12 = vand.u32 2147483647, %v563_v8  ;;  %v392_v28 = vshll.u32 %v1443_v2, 30  ;;  %v415_v6 = vsub.s32 4, %v1443_v2 }
 0x179   :  { %v567_v41 = vmul.f32 %v566_v14, %v564_v12  ;;  %v393_v15 = vsub.s32 %v389_v0, %v392_v28 }
 0x17b   :  { %v568_v16 = vxor.u32 2147483648, %v567_v41  ;;  %vm394_vm13 = vcmp.lt.s32.totalorder %v393_v15, 0  ;;  %v395_v18 = vsub.s32 0, %v393_v15 }
 0x17d   :  { %v569_v17 = vsel %vm448_vm10, %v568_v16, %v567_v41  ;;  %v396_v4 = vsel %vm394_vm13, %v395_v18, %v393_v15  ;;  %vm596_vm10 = vcmp.eq.s32.totalorder %v591_v50, 2  ;;  %vm293_vm13 = vcmp.lt.s32.totalorder %v1336_v63, 0 }
 0x17e   :  { %v572_v20 = vsel %vm447_vm9, %v1322_v47, %v569_v17  ;;  %v397_v23 = vclz %v396_v4  ;;  %vm589_vm9 = vweird.f32 %v1322_v47  ;;  %v416_v47 = vsel %vm293_vm13, %v415_v6, %v1443_v2 }
 0x17f   :  { %v574_v22 = vmul.f32 %v572_v20, %v572_v20 }
 0x180   :  { %v1002_v30 = vadd.s32 4294967294, %v397_v23 }
 0x181   :  { %v582_v27 = vmul.f32 -0.00019511016, %v574_v22  ;;  %v575_v31 = vmul.f32 -0.001358992, %v574_v22 }
 0x182   :  { %vm1003_vm6 = vcmp.lt.s32.totalorder %v1002_v30, 0 }
 0x183   :  { %v583_v32 = vadd.f32 0.008332121, %v582_v27  ;;  %v576_v33 = vadd.f32 0.041655596, %v575_v31  ;;  %v400_v34 = vsel %vm1003_vm6, 0, %v1002_v30 }
 0x184   :  { %v401_v7 = vsub.s32 32, %v400_v34  ;;  %v405_v29 = vsub.s32 4294967266, %v400_v34  ;;  %v402_v39 = vshll.u32 %v393_v15, %v400_v34  ;;  %vm292_vm6 = vcmp.le.f32.partialorder %v291_v5, 0.7853982 }
 0x185   :  { %v584_v36 = vmul.f32 %v583_v32, %v574_v22  ;;  %v577_v37 = vmul.f32 %v576_v33, %v574_v22  ;;  %v418_v15 = vsel %vm292_vm6, 0, %v416_v47 }
 0x186   :  { %v403_v40 = vshrl.u32 %v385_v49, %v401_v7  ;;  %v406_v26 = vadd.s32 127, %v405_v29  ;;  %v435_v19 = vadd.s32 3, %v418_v15  ;;  %v745_v23 = vand.u32 3, %v418_v15 }
 0x187   :  { %v585_v38 = vadd.f32 -0.16666654, %v584_v36  ;;  %v578_v44 = vadd.f32 -0.4999988, %v577_v37 }
 0x188   :  { %v404_v11 = vor.u32 %v403_v40, %v402_v39  ;;  %v407_v46 = vshll.u32 %v406_v26, 23  ;;  %v436_v27 = vand.u32 3, %v435_v19 }
 0x189   :  { %v586_v10 = vmul.f32 %v585_v38, %v574_v22  ;;  %v579_v45 = vmul.f32 %v578_v44, %v574_v22 }
 0x18a   :  { %v408_v21 = vor.u32 4788187, %v407_v46  ;;  %v411_v52 = vcvt.s32.f32 %v404_v11 }
 0x18b   :  { %v587_v48 = vadd.f32 1.0, %v586_v10  ;;  %v580_v59 = vadd.f32 1.0, %v579_v45 }
 0x18c   :  { %v409_v51 = vand.u32 2147483647, %v408_v21 }
 0x18d   :  { %v588_v1 = vmul.f32 %v587_v48, %v572_v20  ;;  %v597_v53 = vxor.u32 2147483648, %v580_v59 }
 0x18e   :  { %v412_v54 = vmul.f32 %v411_v52, %v409_v51 }
 0x18f   :  { %v594_v42 = vxor.u32 2147483648, %v588_v1  ;;  %v906_v55 = vsel %vm904_vm3, %v597_v53, %v588_v1  ;;  %v598_v58 = vsel %vm596_vm10, %v597_v53, %v588_v1  ;;  %vm437_vm3 = vcmp.lt.s32.totalorder %v436_v27, 2 }
 0x190   :  { %v413_v56 = vxor.u32 2147483648, %v412_v54  ;;  %vm750_vm10 = vcmp.eq.s32.totalorder %v745_v23, 2 }
 0x191   :  { %v903_v43 = vsel %vm901_vm15, %v580_v59, %v594_v42  ;;  %v595_v57 = vsel %vm593_vm7, %v580_v59, %v594_v42  ;;  %vm747_vm15 = vcmp.eq.s32.totalorder %v745_v23, 0  ;;  %vm441_vm7 = vcmp.eq.s32.totalorder %v436_v27, 2 }
 0x192   :  { %v907_v60 = vsel %vm900_vm12, %v903_v43, %v906_v55  ;;  %v599_v61 = vsel %vm592_vm0, %v595_v57, %v598_v58  ;;  %v414_v62 = vsel %vm293_vm13, %v413_v56, %v412_v54  ;;  %vm746_vm12 = vcmp.lt.s32.totalorder %v745_v23, 2 }
 0x193   :  { %v908_v0 = vsel %vm589_vm9, nan, %v907_v60  ;;  %v600_v3 = vsel %vm589_vm9, nan, %v599_v61  ;;  %v417_v24 = vsel %vm292_vm6, %v1336_v63, %v414_v62  ;;  %vm438_vm0 = vcmp.eq.s32.totalorder %v436_v27, 0 }
 0x194   :  { %949 = vrot.lane.b32.xlu0 %v908_v0, %s1191_s0  ;;  %953 = vrot.lane.b32.xlu2 %v600_v3, %s1191_s0  ;;  %v419_v8 = vmul.f32 %v417_v24, %v417_v24  ;;  %vm434_vm13 = vweird.f32 %v1336_v63  ;;  %vm1512_vm9 = vcmask 261120  }
 0x196   :  { %v427_v12 = vmul.f32 -0.00019511016, %v419_v8  ;;  %v420_v14 = vmul.f32 -0.001358992, %v419_v8 }
 0x198   :  { %v428_v28 = vadd.f32 0.008332121, %v427_v12  ;;  %v421_v41 = vadd.f32 0.041655596, %v420_v14 }
 0x19a   :  { %v429_v5 = vmul.f32 %v428_v28, %v419_v8  ;;  %v422_v16 = vmul.f32 %v421_v41, %v419_v8 }
 0x19c   :  { %956 = vrot.lane.b32.xlu2 %v908_v0, %s1192_s1  ;;  %941 = vrot.lane.b32.xlu0 %v600_v3, %s1205_s3  ;;  %v430_v18 = vadd.f32 -0.16666654, %v429_v5  ;;  %v423_v17 = vadd.f32 -0.4999988, %v422_v16 }
 0x19e   :  { %v431_v20 = vmul.f32 %v430_v18, %v419_v8  ;;  %v424_v4 = vmul.f32 %v423_v17, %v419_v8 }
 0x1a0   :  { %v432_v22 = vadd.f32 1.0, %v431_v20  ;;  %v425_v25 = vadd.f32 1.0, %v424_v4 }
 0x1a2   :  { %v433_v30 = vmul.f32 %v432_v22, %v417_v24  ;;  %v442_v2 = vxor.u32 2147483648, %v425_v25 }
 0x1a4   :  { %v439_v31 = vxor.u32 2147483648, %v433_v30  ;;  %v443_v33 = vsel %vm441_vm7, %v442_v2, %v433_v30  ;;  %v752_v35 = vsel %vm750_vm10, %v442_v2, %v433_v30 }
 0x1a6   :  { %v440_v32 = vsel %vm438_vm0, %v425_v25, %v439_v31  ;;  %v749_v34 = vsel %vm747_vm15, %v425_v25, %v439_v31 }
 0x1a7   :  { %v444_v36 = vsel %vm437_vm3, %v440_v32, %v443_v33  ;;  %v753_v49 = vsel %vm746_vm12, %v749_v34, %v752_v35 }
 0x1a8   :  { %v445_v7 = vsel %vm434_vm13, nan, %v444_v36  ;;  %v754_v29 = vsel %vm434_vm13, nan, %v753_v49 }
 0x1a9   :  { %914 = vrot.lane.b32.xlu1 %v445_v7, %s1193_s19  ;;  %947 = vrot.lane.b32.xlu2 %v754_v29, %s1191_s0 }
 0x1aa   :  { %910 = vrot.lane.b32.xlu0 %v754_v29, %s1193_s19 }
 0x1b1   :  { %923 = vrot.lane.b32.xlu1 %v754_v29, %s1199_s25  ;;  %926 = vrot.lane.b32.xlu2 %v445_v7, %s1199_s25 }
 0x1b2   :  { %917 = vrot.lane.b32.xlu0 %v754_v29, %s1197_s23 }
 0x1b9   :  { %929 = vrot.lane.b32.xlu1 %v754_v29, %s1202_s28  ;;  %939 = vrot.lane.b32.xlu2 %v445_v7, %s1205_s3 }
 0x1ba   :  { %920 = vrot.lane.b32.xlu0 %v445_v7, %s1197_s23 }
 0x1c1   :  { %932 = vrot.lane.b32.xlu1 %v445_v7, %s1202_s28 }
 0x1c2   :  { %959 = vrot.lane.b32.xlu0 %v600_v3, %s1192_s1 }
 0x1c9   :  { %935 = vrot.lane.b32.xlu1 %v754_v29, %s1205_s3 }
 0x1d1   :  { %962 = vrot.lane.b32.xlu1 %v908_v0, %s1198_s24 }
 0x1ee   :  { %v954_v37 = vpop.permute.xlu2 %953 }
 0x1f6   :  { %v957_v39 = vpop.permute.xlu2 %956 }
 0x203   :  { %v948_v10 = vpop.permute.xlu2 %947 }
 0x206   :  { %v950_v63 = vpop.permute.xlu0 %949 }
 0x207   :  { %v951_v54 = vsel %vm228_vm1, %v948_v10, %v950_v63 }
 0x20b   :  { %v927_v50 = vpop.permute.xlu2 %926 }
 0x20e   :  { %v942_v38 = vpop.permute.xlu0 %941 }
 0x213   :  { %v940_v51 = vpop.permute.xlu2 %939 }
 0x214   :  { %v943_v56 = vsel %vm254_vm14, %v940_v51, %v942_v38 }
 0x21b   :  { %v915_v40 = vpop.permute.xlu1 %914 }
 0x21c   :  { %v911_v26 = vpop.permute.xlu0 %910 }
 0x21d   :  { %v965_v11 = vsel %vm230_vm2, %v445_v7, %v911_v26  ;;  %vm1508_vm2 = vcmask 523264  }
 0x21e   :  { %v966_v46 = vsel %vm236_vm5, %v965_v11, %v915_v40  ;;  %vm1509_vm5 = vcmask 64512  }
 0x21f   :  { %v975_v43 = vsel %vm1509_vm5, %v942_v38, %v951_v54 }
 0x220   :  { %v976_v60 = vsel %vm1512_vm9, %v975_v43, %v954_v37 }
 0x223   :  { %v924_v44 = vpop.permute.xlu1 %923 }
 0x224   :  { %v918_v9 = vpop.permute.xlu0 %917  ;;  %v970_v52 = vsel %vm228_vm1, %v924_v44, %v927_v50  ;;  %vm1513_vm1 = vcmask 457728  }
 0x225   :  { %v967_v13 = vsel %vm242_vm8, %v966_v46, %v918_v9  ;;  %vm1510_vm8 = vcmask 719872   ;;  %v977_v62 = vsel %vm1513_vm1, %v976_v60, %v957_v39 }
 0x22b   :  { %v930_v45 = vpop.permute.xlu1 %929 }
 0x22c   :  { %v921_v48 = vpop.permute.xlu0 %920  ;;  %v971_v53 = vsel %vm234_vm4, %v970_v52, %v930_v45  ;;  %vm1514_vm4 = vcmask 654336  }
 0x22d   :  { %v968_v21 = vsel %vm248_vm11, %v967_v13, %v921_v48  ;;  %vm1511_vm11 = vcmask 916480  }
 0x22e   :  { %v969_v59 = vsel %vm254_vm14, %v968_v21, %v924_v44  ;;  %vm1515_vm14 = vcmask 850944  }
 0x22f   :  { %980 = vst [vmem:[#allocation7] sm:$0xff] %v969_v59 }
 0x233   :  { %v933_v1 = vpop.permute.xlu1 %932 }
 0x234   :  { %v972_v42 = vsel %vm1508_vm2, %v971_v53, %v933_v1  ;;  %v960_v61 = vpop.permute.xlu0 %959 }
 0x235   :  { %v978_v0 = vsel %vm1514_vm4, %v977_v62, %v960_v61 }
 0x23b   :  { %v936_v55 = vpop.permute.xlu1 %935 }
 0x23c   :  { %v973_v57 = vsel %vm1510_vm8, %v972_v42, %v936_v55 }
 0x23d   :  { %v974_v58 = vsel %vm1511_vm11, %v973_v57, %v943_v56 }
 0x23e   :  { %981 = vst [vmem:[#allocation7 + $0x8] sm:$0xff] %v974_v58 }
 0x243   :  { %v963_v3 = vpop.permute.xlu1 %962 }
 0x244   :  { %v979_v6 = vsel %vm1515_vm14, %v978_v0, %v963_v3 }
 0x245   :  { %982 = vst [vmem:[#allocation7 + $0x10] sm:$0xff] %v979_v6 }
 0x246   :  { %993 = dma.vmem_to_hbm [thread:$0]  %s989_s5, 384, %s991_s8, [#allocation4]  }
 0x247   :  { %1163 = dma.done.wait [#allocation4], 384  }
 0x248   :  { %1164 = vsyncadd [#allocation4], 4294966912 }
 0x249   :  { %998 = vsyncpa [#allocation3], 1 }
 0x24a   :  { %999 = vsyncpa [#allocation6], 1 }
 0x24b   :  { %1000 = vsyncpa [#allocation4], 1 }

</bundles_post_ra>
